<compile_context>
chip_gen: v6e
topology: v6e:2x2x1
jax: 0.10.0
libtpu: 0.0.40
codegen_flags: <defaults>
</compile_context>

<pallas_src>
import functools
import math
from dataclasses import dataclass

import jax
import jax.numpy as jnp
from jax.experimental import pallas as pl
from jax.experimental.pallas import tpu as pltpu


_LANE = 128


def _round_up(x, m):
    return (x + m - 1) // m * m


def _cdiv(a, b):
    return (a + b - 1) // b


def _dtype_params(dtype):
    """(sublane multiple, tm_cap, tn_cap, tk_cap) for a compute dtype."""
    itemsize = jnp.dtype(dtype).itemsize
    if itemsize >= 4:               # f32
        return 8, 256, 256, 512
    if itemsize == 2:               # bf16 / f16
        return 16, 512, 512, 1024
    return 32, 512, 512, 1024       # int8 / fp8


def _balanced_tiles(dim, cap, align):
    """Split `dim` into equal-ish align-multiple tiles no larger than ~cap.

    Returns (num_tiles, tile, padded_dim = num_tiles * tile).
    """
    n = max(_cdiv(dim, cap), 1)
    tile = _round_up(_cdiv(dim, n), align)
    return n, tile, n * tile


# ---------------------------------------------------------------------------
# Kernels
# ---------------------------------------------------------------------------

def _equal_linear_kernel_1k(x_ref, w_ref, b_ref, o_ref, *, scale):
    # Single K tile: no accumulator scratch, no pl.when. MXU matmul in the
    # native compute dtype with f32 accumulation; equal-lr scale + bias applied
    # once on the f32 result, then downcast on store (lane-dense, out_dim last).
    acc = jnp.dot(x_ref[...], w_ref[...], preferred_element_type=jnp.float32)
    o_ref[...] = (acc * scale + b_ref[...]).astype(o_ref.dtype)


def _equal_linear_kernel_mk(x_ref, w_ref, b_ref, o_ref, acc_ref, *, scale):
    # Multi-K: f32 accumulator resident in VMEM scratch across the K axis.
    k = pl.program_id(2)

    @pl.when(k == 0)
    def _():
        acc_ref[...] = jnp.zeros_like(acc_ref)

    acc_ref[...] += jnp.dot(x_ref[...], w_ref[...],
                            preferred_element_type=jnp.float32)

    @pl.when(k == pl.num_programs(2) - 1)
    def _():
        o_ref[...] = (acc_ref[...] * scale + b_ref[...]).astype(o_ref.dtype)


# ---------------------------------------------------------------------------
# Parameter preparation (hoisted out of the per-call path)
# ---------------------------------------------------------------------------

@dataclass(frozen=True)
class EqualLinearParams:
    w_p: jax.Array          # [k_pad, n_pad], compute dtype, pre-transposed
    b_p: jax.Array          # [1, n_pad], float32
    scale: float
    in_dim: int
    out_dim: int
    tk: int
    tn: int
    k_pad: int
    n_pad: int
    compute_dtype: jnp.dtype


def equal_linear_prepare(weight_orig, bias, compute_dtype=None):
    """One-time per-parameter work: transpose, cast, pad (do NOT call per step)."""
    out_dim, in_dim = weight_orig.shape
    compute_dtype = jnp.dtype(compute_dtype) if compute_dtype is not None \
        else jnp.dtype(weight_orig.dtype)
    _, _, tn_cap, tk_cap = _dtype_params(compute_dtype)

    _, tk, k_pad = _balanced_tiles(in_dim, tk_cap, _LANE)
    _, tn, n_pad = _balanced_tiles(out_dim, tn_cap, _LANE)

    # Transpose once to [in_dim, out_dim] so the kernel does a plain x @ W
    # (no in-kernel relayout) and the output lane axis is out_dim.
    w_t = weight_orig.T.astype(compute_dtype)
    w_p = jnp.pad(w_t, ((0, k_pad - in_dim), (0, n_pad - out_dim)))
    b_p = jnp.pad(bias.astype(jnp.float32), (0, n_pad - out_dim)).reshape(1, n_pad)

    scale = math.sqrt(2.0 / in_dim)   # fan_in = in_dim * 1 for nn.Linear
    return EqualLinearParams(w_p, b_p, scale, in_dim, out_dim,
                             tk, tn, k_pad, n_pad, compute_dtype)


# ---------------------------------------------------------------------------
# Forward
# ---------------------------------------------------------------------------

def equal_linear_apply(params, x):
    """x: [batch, in_dim] -> [batch, out_dim] = x @ (W*sqrt(2/in_dim)).T + b."""
    batch, in_dim = x.shape
    assert in_dim == params.in_dim
    out_dtype = x.dtype

    sublane, tm_cap, _, _ = _dtype_params(params.compute_dtype)
    nm, tm, m_pad = _balanced_tiles(batch, tm_cap, sublane)

    tk, k_pad = params.tk, params.k_pad
    tn, n_pad = params.tn, params.n_pad
    nk = k_pad // tk
    nn = n_pad // tn

    # v7x megacore: make sure the "parallel" grid axes have >= 2 blocks so both
    # TensorCores get work; split N when it is the only way to get there.
    if nm * nn < 2 and n_pad % (2 * _LANE) == 0:
        tn = n_pad // 2
        nn = 2

    x_c = x.astype(params.compute_dtype) if x.dtype != params.compute_dtype else x
    x_p = jnp.pad(x_c, ((0, m_pad - batch), (0, k_pad - in_dim)))

    # Scoped VMEM budget from the real per-operand itemsizes; cap at 32 MiB
    # (headroom on v7x's 64 MiB physical / 2 TCs).
    cd_item = jnp.dtype(params.compute_dtype).itemsize
    out_item = jnp.dtype(out_dtype).itemsize
    vmem_bytes = (2 * (tm * tk * cd_item + tk * tn * cd_item
                       + tn * 4 + tm * tn * out_item)
                  + (tm * tn * 4 if nk > 1 else 0))
    vmem_limit = int(min(max(2 * vmem_bytes, 8 << 20), 32 << 20))

    if nk == 1:
        # Fast path: whole K in one tile. For small batch (nm == 1) the x tile
        # block index is constant across the grid, so x is DMA'd only once and
        # the pipeline streams only W.
        out_p = pl.pallas_call(
            functools.partial(_equal_linear_kernel_1k, scale=params.scale),
            out_shape=jax.ShapeDtypeStruct((m_pad, n_pad), out_dtype),
            grid_spec=pltpu.PrefetchScalarGridSpec(
                num_scalar_prefetch=0,
                grid=(nm, nn),
                in_specs=[
                    pl.BlockSpec((tm, k_pad), lambda i, j: (i, 0)),   # x
                    pl.BlockSpec((k_pad, tn), lambda i, j: (0, j)),   # W.T
                    pl.BlockSpec((1, tn), lambda i, j: (0, j)),       # bias
                ],
                out_specs=pl.BlockSpec((tm, tn), lambda i, j: (i, j)),
            ),
            compiler_params=pltpu.CompilerParams(
                dimension_semantics=("parallel", "parallel"),
                vmem_limit_bytes=vmem_limit,
            ),
        )(x_p, params.w_p, params.b_p)
    else:
        out_p = pl.pallas_call(
            functools.partial(_equal_linear_kernel_mk, scale=params.scale),
            out_shape=jax.ShapeDtypeStruct((m_pad, n_pad), out_dtype),
            grid_spec=pltpu.PrefetchScalarGridSpec(
                num_scalar_prefetch=0,
                grid=(nm, nn, nk),
                in_specs=[
                    pl.BlockSpec((tm, tk), lambda i, j, k: (i, k)),   # x
                    pl.BlockSpec((tk, tn), lambda i, j, k: (k, j)),   # W.T
                    pl.BlockSpec((1, tn), lambda i, j, k: (0, j)),    # bias
                ],
                out_specs=pl.BlockSpec((tm, tn), lambda i, j, k: (i, j)),
                scratch_shapes=[pltpu.VMEM((tm, tn), jnp.float32)],
            ),
            compiler_params=pltpu.CompilerParams(
                dimension_semantics=("parallel", "parallel", "arbitrary"),
                vmem_limit_bytes=vmem_limit,
            ),
        )(x_p, params.w_p, params.b_p)

    return out_p[:batch, :params.out_dim]


def equal_linear(x, weight_orig, bias, compute_dtype=None):
    """One-shot convenience wrapper. For repeated calls with the same weights,
    hoist `equal_linear_prepare` and call `equal_linear_apply` directly."""
    return equal_linear_apply(
        equal_linear_prepare(weight_orig, bias, compute_dtype), x)


if __name__ == "__main__":
    key = jax.random.PRNGKey(0)
    kx1, kw1, kx2, kw2 = jax.random.split(key, 4)

    # --- Test 1: small shape, f32 compute, single-K fast path -------------
    batch, in_dim, out_dim = 8, 32, 64
    # Deterministic init matching nn.Linear + .normal_() / .zero_():
    weight_orig = jax.random.normal(kw1, (out_dim, in_dim), dtype=jnp.float32)
    bias = jnp.zeros((out_dim,), dtype=jnp.float32)
    x = jax.random.normal(kx1, (batch, in_dim), dtype=jnp.float32)

    params = equal_linear_prepare(weight_orig, bias)       # hoisted prep
    out = jax.block_until_ready(equal_linear_apply(params, x))
    ref = x @ (weight_orig * math.sqrt(2.0 / in_dim)).T + bias
    assert out.shape == (batch, out_dim)
    assert jnp.allclose(out, ref, atol=1e-4, rtol=1e-4)

    # --- Test 2: ragged K, multi-K accumulator path + megacore N split ----
    batch2, in_dim2, out_dim2 = 8, 640, 256
    w2 = jax.random.normal(kw2, (out_dim2, in_dim2), dtype=jnp.float32)
    b2 = jnp.zeros((out_dim2,), dtype=jnp.float32)
    x2 = jax.random.normal(kx2, (batch2, in_dim2), dtype=jnp.float32)

    p2 = equal_linear_prepare(w2, b2)
    out2 = jax.block_until_ready(equal_linear_apply(p2, x2))
    ref2 = x2 @ (w2 * math.sqrt(2.0 / in_dim2)).T + b2
    assert out2.shape == (batch2, out_dim2)
    assert jnp.allclose(out2, ref2, atol=5e-3, rtol=5e-3)

    # --- Test 3: bf16 compute path (f32 I/O, f32 MXU accumulation) --------
    p3 = equal_linear_prepare(weight_orig, bias, compute_dtype=jnp.bfloat16)
    out3 = jax.block_until_ready(equal_linear_apply(p3, x))
    assert out3.shape == (batch, out_dim)
    assert jnp.allclose(out3, ref, atol=1e-1, rtol=1e-1)

    print("KERNEL_OK")
</pallas_src>

<mosaic_0001>
module attributes {stable_mosaic.version = 11 : i64} {
  func.func @_equal_linear_kernel_1k(%arg0: i32, %arg1: i32, %arg2: memref<8x128xf32, #tpu.memory_space<vmem>>, %arg3: memref<128x128xf32, #tpu.memory_space<vmem>>, %arg4: memref<1x128xf32, #tpu.memory_space<vmem>>, %arg5: memref<8x128xf32, #tpu.memory_space<vmem>>) attributes {dimension_semantics = [#tpu.dimension_semantics<parallel>, #tpu.dimension_semantics<parallel>], iteration_bounds = array<i64: 1, 1>, scalar_prefetch = 0 : i64, scratch_operands = 0 : i64, tpu.core_type = #tpu.core_type<tc>, window_params = [{transform_indices = @transform_0, window_bounds = array<i64: 8, 128>}, {transform_indices = @transform_1, window_bounds = array<i64: 128, 128>}, {transform_indices = @transform_2, window_bounds = array<i64: 1, 128>}, {transform_indices = @transform_3, window_bounds = array<i64: 8, 128>}]} {
    %c0 = arith.constant 0 : index
    %c0_0 = arith.constant 0 : index
    %0 = vector.load %arg2[%c0, %c0_0] : memref<8x128xf32, #tpu.memory_space<vmem>>, vector<8x128xf32>
    %c0_1 = arith.constant 0 : index
    %c0_2 = arith.constant 0 : index
    %1 = vector.load %arg3[%c0_1, %c0_2] : memref<128x128xf32, #tpu.memory_space<vmem>>, vector<128x128xf32>
    %cst = arith.constant dense<0.000000e+00> : vector<8x128xf32>
    %2 = tpu.matmul %0, %1, %cst {dimension_numbers = #tpu.dot_dimension_numbers<[1], [0], [0], [1], [0, 0, 1, 1], [], []>} : vector<8x128xf32>, vector<128x128xf32>, vector<8x128xf32> -> vector<8x128xf32>
    %cst_3 = arith.constant 2.500000e-01 : f32
    %3 = vector.broadcast %cst_3 : f32 to vector<8x128xf32>
    %4 = arith.mulf %2, %3 : vector<8x128xf32>
    %c0_4 = arith.constant 0 : index
    %c0_5 = arith.constant 0 : index
    %5 = vector.load %arg4[%c0_4, %c0_5] : memref<1x128xf32, #tpu.memory_space<vmem>>, vector<1x128xf32>
    %6 = vector.broadcast %5 : vector<1x128xf32> to vector<8x128xf32>
    %7 = arith.addf %4, %6 : vector<8x128xf32>
    %c0_6 = arith.constant 0 : index
    %c0_7 = arith.constant 0 : index
    %8 = vector.load %arg5[%c0_6, %c0_7] : memref<8x128xf32, #tpu.memory_space<vmem>>, vector<8x128xf32>
    tpu.vector_store %arg5[%c0_6, %c0_7], %7 {strides = array<i32>} : memref<8x128xf32, #tpu.memory_space<vmem>>, vector<8x128xf32>,
    return
  }
  func.func @transform_0(%arg0: i32, %arg1: i32) -> (i32, i32) {
    %c0_i32 = arith.constant 0 : i32
    %c0_i32_0 = arith.constant 0 : i32
    return %arg0, %c0_i32 : i32, i32
  }
  func.func @transform_1(%arg0: i32, %arg1: i32) -> (i32, i32) {
    %c0_i32 = arith.constant 0 : i32
    %c0_i32_0 = arith.constant 0 : i32
    return %c0_i32, %arg1 : i32, i32
  }
  func.func @transform_2(%arg0: i32, %arg1: i32) -> (i32, i32) {
    %c0_i32 = arith.constant 0 : i32
    %c0_i32_0 = arith.constant 0 : i32
    return %c0_i32, %arg1 : i32, i32
  }
  func.func @transform_3(%arg0: i32, %arg1: i32) -> (i32, i32) {
    %c0_i32 = arith.constant 0 : i32
    return %arg0, %arg1 : i32, i32
  }
}

</mosaic_0001>

<bundles_post_ra>
// kernel: tpu_custom_call.1
= control target key start
LH: loop header
LB: loop body
LE: loop exit
PB: predicated region body
PF: predicated region fallthrough
CT: control target
= control target key end

     0   :  { %8 = vsyncpa [#allocation3], 0  ;;  %s319_s0 = inlined_call_operand.hbm [shape: f32[8,128], index: 0, kind: input, shape index: {}]   ;;  %s320_s1 = inlined_call_operand.hbm [shape: f32[128,128], index: 1, kind: input, shape index: {}]   ;;  %s321_s2 = inlined_call_operand.vmem [shape: f32[1,128], index: 2, kind: input, shape index: {}]   ;;  %s322_s3 = inlined_call_operand.hbm [shape: f32[8,128], index: 3, kind: output, shape index: {}]  }
   0x1   :  { %9 = vsyncpa [#allocation6], 0 }
   0x2   :  { %10 = vsyncpa [#allocation4], 0  ;;  %s280_s12 = smov [#allocation2]   ;;  %s281_s14 = smov [#allocation5]  }
   0x3   :  { %s17_s13 = sshll.u32 %s280_s12, 4  ;;  %s26_s15 = sshll.u32 %s281_s14, 4  ;;  %s18_s13 = int_to_ptr.vmem [resolvable:$true] %s17_s13  ;;  %s27_s15 = int_to_ptr.vmem [resolvable:$true] %s26_s15 }
   0x4   :  { %s222_s16 = scalar_lea.vmem %s18_s13, 128  ;;  %p227_p1 = scmp.lt.s32.totalorder %s18_s13, %s18_s13 }
   0x5   :  { %p223_p0 = scmp.ne.s32.totalorder %s18_s13, %s222_s16  ;;  %p228_p2 = scmp.lt.s32.totalorder %s222_s16, %s222_s16 }
   0x7   :  { %p229_p3 = por %p228_p2, %p227_p1 }
   0x9   :  { %p230_p4 = pnand %p229_p3, %p223_p0 }
   0xb   :  { %233 = shalt.err (!%p230_p4)
}
   0xc   :  { %20 = dma.hbm_to_vmem [thread:$0]  %s319_s0, 128, %s18_s13, [#allocation3]  }
   0xd   :  { %s242_s19 = scalar_lea.vmem %s27_s15, 2048  ;;  %p247_p6 = scmp.lt.s32.totalorder %s27_s15, %s27_s15 }
   0xe   :  { %p243_p5 = scmp.ne.s32.totalorder %s27_s15, %s242_s19  ;;  %p248_p7 = scmp.lt.s32.totalorder %s242_s19, %s242_s19 }
  0x10   :  { %p249_p8 = por %p248_p7, %p247_p6 }
  0x12   :  { %p250_p9 = pnand %p249_p8, %p243_p5 }
  0x14   :  { %253 = shalt.err (!%p250_p9)
}
  0x15   :  { %s282_s20 = smov 128   ;;  %s283_s21 = smov 8  }
  0x16   :  { %32 = dma.hbm_to_vmem [thread:$0]  %s320_s1, 2048, %s27_s15, [#allocation6], %s282_s20, %s282_s20, %s283_s21  }
  0x17   :  { %274 = dma.done.wait [#allocation3], 128  }
  0x18   :  { %275 = vsyncadd [#allocation3], 4294967168 }
  0x19   :  { %276 = dma.done.wait [#allocation6], 2048  }
  0x1a   :  { %277 = vsyncadd [#allocation6], 4294965248  ;;  %v284_v0 = vmov 0.0   ;;  %vm285_vm0 = vmmov 0   ;;  %v57_v1 = vld [vmem:[#allocation5 + $0x78] sm:$0xff]  ;;  %v56_v2 = vld [vmem:[#allocation5 + $0x70] sm:$0xff] }
  0x1b   :  { %172 = vmatprep.subr.mxu0 %v284_v0  ;;  %204 = vmatprep.mubr.msk.f32.mxu0 %vm285_vm0, %v284_v0  ;;  %v55_v3 = vld [vmem:[#allocation5 + $0x68] sm:$0xff]  ;;  %v54_v4 = vld [vmem:[#allocation5 + $0x60] sm:$0xff]  ;;  %v53_v5 = vld [vmem:[#allocation5 + $0x58] sm:$0xff]  ;;  %s286_s24 = smov [#allocation7]  }
  0x1c   :  { %173 = vmatpush3.msra.mxu0 %v57_v1  ;;  %v52_v6 = vld [vmem:[#allocation5 + $0x50] sm:$0xff]  ;;  %v51_v7 = vld [vmem:[#allocation5 + $0x48] sm:$0xff]  ;;  %v50_v8 = vld [vmem:[#allocation5 + $0x40] sm:$0xff]  ;;  %s144_s25 = sshll.u32 %s286_s24, 4  ;;  %s145_s25 = int_to_ptr.vmem [resolvable:$true] %s144_s25 }
  0x1d   :  { %174 = vmatprep.subr.mxu0 %v284_v0  ;;  %v49_v9 = vld [vmem:[#allocation5 + $0x38] sm:$0xff]  ;;  %v48_v10 = vld [vmem:[#allocation5 + $0x30] sm:$0xff]  ;;  %v47_v11 = vld [vmem:[#allocation5 + $0x28] sm:$0xff]  ;;  %s254_s26 = scalar_lea.vmem %s145_s25, 128  ;;  %p259_p11 = scmp.lt.s32.totalorder %s145_s25, %s145_s25 }
  0x1e   :  { %175 = vmatpush3.msra.mxu0 %v56_v2  ;;  %v46_v12 = vld [vmem:[#allocation5 + $0x20] sm:$0xff]  ;;  %v45_v13 = vld [vmem:[#allocation5 + $0x18] sm:$0xff]  ;;  %v44_v14 = vld [vmem:[#allocation5 + $0x10] sm:$0xff]  ;;  %p255_p10 = scmp.ne.s32.totalorder %s145_s25, %s254_s26  ;;  %p260_p12 = scmp.lt.s32.totalorder %s254_s26, %s254_s26 }
  0x1f   :  { %176 = vmatprep.subr.mxu0 %v284_v0  ;;  %v43_v15 = vld [vmem:[#allocation5 + $0x8] sm:$0xff]  ;;  %v42_v16 = vld [vmem:[#allocation5] sm:$0xff]  ;;  %v41_v17 = vld [vmem:[#allocation2] sm:$0xff] }
  0x20   :  { %177 = vmatpush3.msra.mxu0 %v55_v3  ;;  %v154_v19 = vld [vmem:[%s321_s2] ss:$0 sm:$0xff]  ;;  %p261_p13 = por %p260_p12, %p259_p11 }
  0x21   :  { %178 = vmatprep.subr.mxu0 %v284_v0 }
  0x22   :  { %179 = vmatpush3.msra.mxu0 %v54_v4  ;;  %p262_p0 = pnand %p261_p13, %p255_p10 }
  0x23   :  { %180 = vmatprep.subr.mxu0 %v284_v0 }
  0x24   :  { %181 = vmatpush3.msra.mxu0 %v53_v5 }
  0x25   :  { %182 = vmatprep.subr.mxu0 %v284_v0 }
  0x26   :  { %183 = vmatpush3.msra.mxu0 %v52_v6 }
  0x27   :  { %184 = vmatprep.subr.mxu0 %v284_v0 }
  0x28   :  { %185 = vmatpush3.msra.mxu0 %v51_v7 }
  0x29   :  { %186 = vmatprep.subr.mxu0 %v284_v0 }
  0x2a   :  { %187 = vmatpush3.msra.mxu0 %v50_v8 }
  0x2b   :  { %188 = vmatprep.subr.mxu0 %v284_v0 }
  0x2c   :  { %189 = vmatpush3.msra.mxu0 %v49_v9 }
  0x2d   :  { %190 = vmatprep.subr.mxu0 %v284_v0 }
  0x2e   :  { %191 = vmatpush3.msra.mxu0 %v48_v10 }
  0x2f   :  { %192 = vmatprep.subr.mxu0 %v284_v0 }
  0x30   :  { %193 = vmatpush3.msra.mxu0 %v47_v11 }
  0x31   :  { %194 = vmatprep.subr.mxu0 %v284_v0 }
  0x32   :  { %195 = vmatpush3.msra.mxu0 %v46_v12 }
  0x33   :  { %196 = vmatprep.subr.mxu0 %v284_v0 }
  0x34   :  { %197 = vmatpush3.msra.mxu0 %v45_v13 }
  0x35   :  { %198 = vmatprep.subr.mxu0 %v284_v0 }
  0x36   :  { %199 = vmatpush3.msra.mxu0 %v44_v14 }
  0x37   :  { %200 = vmatprep.subr.mxu0 %v284_v0 }
  0x38   :  { %201 = vmatpush3.msra.mxu0 %v43_v15 }
  0x39   :  { %202 = vmatprep.subr.mxu0 %v284_v0 }
  0x3a   :  { %203 = vmatpush3.msra.mxu0 %v42_v16 }
  0x3b   :  { %205 = vmatmul.mubr.f32.vlgmr.msra.gmra.mxu0 %v41_v17 }
  0xfb   :  { %v124_v18 = vpop.f32.mrf.mxu0 }
  0xfc   :  { %v128_v20 = vmul.f32 0.25, %v124_v18 }
  0xfd   :  { %v206_v21 = vpop.f32.mrf.mxu0 }
  0xfe   :  { %v136_v22 = vadd.f32 %v154_v19, %v128_v20 }
 0x100   :  { %137 = vst [vmem:[#allocation7] sm:$0xff] %v136_v22 }
 0x101   :  { %265 = shalt.err (!%p262_p0)
}
 0x102   :  { %147 = dma.vmem_to_hbm [thread:$0]  %s145_s25, 128, %s322_s3, [#allocation4]  }
 0x103   :  { %278 = dma.done.wait [#allocation4], 128  }
 0x104   :  { %279 = vsyncadd [#allocation4], 4294967168 }
 0x105   :  { %151 = vsyncpa [#allocation3], 1 }
 0x106   :  { %152 = vsyncpa [#allocation6], 1 }
 0x107   :  { %153 = vsyncpa [#allocation4], 1 }

</bundles_post_ra>
